<compile_context>
chip_gen: v5e
topology: v5e:2x2
jax: 0.10.0
libtpu: 0.0.40
codegen_flags: <defaults>
</compile_context>

<pallas_src>
import functools
import math

import jax
import jax.numpy as jnp
from jax.experimental import pallas as pl
from jax.experimental.pallas import tpu as pltpu


def _flash_cross_attn_kernel(x_ref, k_ref, v_ref, wq_ref, bq_ref, wo_ref, bo_ref,
                             out_ref, q_scr, m_scr, l_scr, acc_scr,
                             *, num_heads, dim_head):
    """One (batch, q-tile, kv-tile) grid step; kv-tile is the innermost axis."""
    H, d = num_heads, dim_head
    kv_idx = pl.program_id(2)

    @pl.when(kv_idx == 0)
    def _init():
        # Query projection once per (b, q-tile); 1/sqrt(d) already folded into
        # wq/bq in the wrapper.  bf16 MXU operands, fp32 accumulation + bias.
        x = x_ref[0]                                                     # [tq, Dq] bf16
        q = jnp.dot(x, wq_ref[...], preferred_element_type=jnp.float32)
        q = q + bq_ref[...]                                              # fp32 bias
        tq = q.shape[0]
        # Head split 'n (h d) -> h n d' once per q-tile (small side only).
        q_scr[...] = jnp.transpose(q.astype(jnp.bfloat16).reshape(tq, H, d),
                                   (1, 0, 2))                            # [H, tq, d]
        m_scr[...] = jnp.full(m_scr.shape, -jnp.inf, dtype=jnp.float32)
        l_scr[...] = jnp.zeros(l_scr.shape, dtype=jnp.float32)
        acc_scr[...] = jnp.zeros(acc_scr.shape, dtype=jnp.float32)

    qh = q_scr[...]        # [H, tq,  d]  bf16 (pre-scaled)
    kh = k_ref[0]          # [H, tkv, d]  bf16
    vh = v_ref[0]          # [H, tkv, d]  bf16

    # s[h,i,j] = sum_d qh[h,i,d] * kh[h,j,d]  -- batched over heads, contract d
    # directly (no k transpose materialized).
    s = jax.lax.dot_general(qh, kh, (((2,), (2,)), ((0,), (0,))),
                            preferred_element_type=jnp.float32)          # [H, tq, tkv]

    # Online-softmax update (fp32), normalization deferred to the epilogue.
    m_prev = m_scr[...]
    m_new = jnp.maximum(m_prev, jnp.max(s, axis=-1, keepdims=True))
    alpha = jnp.exp(m_prev - m_new)
    p = jnp.exp(s - m_new)                                               # un-normalized
    l_scr[...] = alpha * l_scr[...] + jnp.sum(p, axis=-1, keepdims=True)
    # o[h,i,e] = sum_j p[h,i,j] * vh[h,j,e]
    pv = jax.lax.dot_general(p.astype(jnp.bfloat16), vh,
                             (((2,), (1,)), ((0,), (0,))),
                             preferred_element_type=jnp.float32)         # [H, tq, d]
    acc_scr[...] = alpha * acc_scr[...] + pv
    m_scr[...] = m_new

    @pl.when(kv_idx == pl.num_programs(2) - 1)
    def _finalize():
        # Deferred normalization on the fp32 [H, tq, d] accumulator (Nc/d times
        # less VALU work than normalizing the prob matrix); EUP approx recip.
        o = acc_scr[...] * pl.reciprocal(l_scr[...], approx=True)
        tq = o.shape[1]
        # Merge heads 'h n d -> n (h d)'; stay bf16 straight into to_out.
        attn = jnp.transpose(o, (1, 0, 2)).reshape(tq, H * d).astype(jnp.bfloat16)
        out = jnp.dot(attn, wo_ref[...], preferred_element_type=jnp.float32)
        out_ref[0] = (out + bo_ref[...]).astype(out_ref.dtype)

    # TODO(synk): attention dropout (dropout_p > 0 in training mode) is not
    # implemented; this kernel reproduces eval-mode semantics (dropout_p = 0).


def _pick_tile(n, target):
    """Largest tile <= target dividing n; prefer MXU-width (128) multiples
    (keeps matmul M/N dims full), then sublane (8) multiples.  Falls back to
    the full extent for awkward (prime/odd) n — callers can override via
    q_tile / kv_tile if that would blow the VMEM budget."""
    if n <= target:
        return n
    for step in (128, 8):
        t = (target // step) * step
        while t >= step:
            if n % t == 0:
                return t
            t -= step
    return n


def _vmem_limit_bytes():
    """Generation-aware VMEM cap: ~96 MiB on v5e/v6e (128 MiB physical),
    ~48 MiB on v7x (64 MiB physical) — well above the scoped defaults."""
    try:
        cap = pltpu.get_tpu_info().vmem_capacity_bytes
    except Exception:  # query unavailable: assume 128 MiB-class part
        cap = 128 * 1024 * 1024
    return min(cap * 3 // 4, 100 * 1024 * 1024)


def flash_cross_attention(x, context, params, *, num_heads, q_tile=None, kv_tile=None):
    """Pallas wrapper reproducing FlashCrossAttention.forward (eval mode)."""
    B, Nq, Dq = x.shape
    _, Nc, Dc = context.shape
    assert Dq % num_heads == 0
    d = Dq // num_heads
    inner = Dq
    scale = 1.0 / math.sqrt(d)

    # --- weight prep (amortized under jit) --------------------------------
    # bf16 MXU operands; fp32 biases added onto fp32 accumulators.
    # 1/sqrt(d) folded into the query projection weight AND bias.
    wq = (params["wq"].astype(jnp.float32) * scale).astype(jnp.bfloat16)  # [Dq, inner]
    bq = params["bq"].astype(jnp.float32) * scale                         # [1, inner]
    wo = params["wo"].astype(jnp.bfloat16)                                # [inner, Dq]
    bo = params["bo"].astype(jnp.float32)                                 # [1, Dq]
    # to_kv fused weight columns are ordered [K | V] (torch .chunk(2, dim=-1)).
    wk = params["wkv"][:, :inner].astype(jnp.bfloat16)                    # [Dc, inner]
    wv = params["wkv"][:, inner:].astype(jnp.bfloat16)
    bk = params["bkv"][:, :inner].astype(jnp.float32)
    bv = params["bkv"][:, inner:].astype(jnp.float32)

    # --- K/V projection ONCE per forward (plain XLA), head-major bf16 -----
    # Keeping this in the kernel would redo 2*Nc*Dc*inner MXU FLOPs per query
    # tile; hoisting it also removes wkv/bkv and the k/v head transposes from
    # the kernel's VMEM / XLU budget.
    ctx_bf = context.astype(jnp.bfloat16)
    k = jnp.dot(ctx_bf, wk, preferred_element_type=jnp.float32) + bk
    v = jnp.dot(ctx_bf, wv, preferred_element_type=jnp.float32) + bv
    k = jnp.transpose(k.reshape(B, Nc, num_heads, d), (0, 2, 1, 3)).astype(jnp.bfloat16)
    v = jnp.transpose(v.reshape(B, Nc, num_heads, d), (0, 2, 1, 3)).astype(jnp.bfloat16)

    x_bf = x.astype(jnp.bfloat16)   # halve activation HBM->VMEM DMA bytes

    tq = q_tile if q_tile is not None else _pick_tile(Nq, 256)
    tkv = kv_tile if kv_tile is not None else _pick_tile(Nc, 256)
    assert Nq % tq == 0 and Nc % tkv == 0

    kernel = functools.partial(_flash_cross_attn_kernel,
                               num_heads=num_heads, dim_head=d)

    # Constant-index weight/bias blocks: single-buffered (the second pipeline
    # buffer would be pure VMEM waste — matters for v7x's 64 MiB VMEM).
    def _const_spec(shape):
        return pl.BlockSpec(shape, lambda b, i, j: (0,) * len(shape),
                            pipeline_mode=pl.Buffered(1))

    flops = (2 * B * Nq * Dq * inner                # q projection
             + 4 * B * num_heads * Nq * Nc * d      # QK^T + PV
             + 2 * B * Nq * inner * Dq)             # output projection
    cost = pl.CostEstimate(
        flops=flops,
        transcendentals=B * num_heads * Nq * Nc,
        bytes_accessed=(2 * (B * Nq * Dq) + 2 * 2 * (B * num_heads * Nc * d)
                        + 2 * (wq.size + wo.size) + B * Nq * Dq * x.dtype.itemsize))

    return pl.pallas_call(
        kernel,
        out_shape=jax.ShapeDtypeStruct((B, Nq, Dq), x.dtype),
        grid_spec=pltpu.PrefetchScalarGridSpec(
            num_scalar_prefetch=0,
            grid=(B, Nq // tq, Nc // tkv),
            in_specs=[
                pl.BlockSpec((1, tq, Dq), lambda b, i, j: (b, i, 0)),               # x
                pl.BlockSpec((1, num_heads, tkv, d), lambda b, i, j: (b, 0, j, 0)),  # k
                pl.BlockSpec((1, num_heads, tkv, d), lambda b, i, j: (b, 0, j, 0)),  # v
                _const_spec((Dq, inner)),     # wq (pre-scaled)
                _const_spec((1, inner)),      # bq (pre-scaled)
                _const_spec((inner, Dq)),     # wo
                _const_spec((1, Dq)),         # bo
            ],
            out_specs=pl.BlockSpec((1, tq, Dq), lambda b, i, j: (b, i, 0)),
            scratch_shapes=[
                pltpu.VMEM((num_heads, tq, d), jnp.bfloat16),   # cached q (head-major)
                pltpu.VMEM((num_heads, tq, 1), jnp.float32),    # running max m
                pltpu.VMEM((num_heads, tq, 1), jnp.float32),    # running denom l
                pltpu.VMEM((num_heads, tq, d), jnp.float32),    # fp32 accumulator
            ]),
        compiler_params=pltpu.CompilerParams(
            dimension_semantics=("parallel", "parallel", "arbitrary"),
            vmem_limit_bytes=_vmem_limit_bytes()),
        cost_estimate=cost,
    )(x_bf, k, v, wq, bq, wo, bo)


def _reference(x, context, params, *, num_heads):
    """Pure-JAX fp32 reference of the PyTorch forward (same math)."""
    B, Nq, Dq = x.shape
    d = Dq // num_heads
    q = x @ params["wq"] + params["bq"]
    kv = context @ params["wkv"] + params["bkv"]
    k, v = kv[..., :Dq], kv[..., Dq:]

    def split(t):
        return t.reshape(t.shape[0], t.shape[1], num_heads, d).transpose(0, 2, 1, 3)

    q, k, v = split(q), split(k), split(v)
    s = jnp.einsum("bhqd,bhkd->bhqk", q, k) / math.sqrt(d)
    p = jax.nn.softmax(s, axis=-1)
    o = jnp.einsum("bhqk,bhkd->bhqd", p, v)
    o = o.transpose(0, 2, 1, 3).reshape(B, Nq, Dq)
    return o @ params["wo"] + params["bo"]


if __name__ == "__main__":
    # Small shapes consistent with the module's forward.
    B, Nq, Nc = 2, 8, 16
    query_dim, context_dim, num_heads = 32, 48, 4

    key = jax.random.PRNGKey(0)
    keys = jax.random.split(key, 8)

    x = jax.random.normal(keys[0], (B, Nq, query_dim), dtype=jnp.float32)
    context = jax.random.normal(keys[1], (B, Nc, context_dim), dtype=jnp.float32)

    # Deterministic parameter init (weights stored as [in_features, out_features]).
    def init_linear(kw, kb, fan_in, fan_out):
        bound = 1.0 / math.sqrt(fan_in)
        w = jax.random.uniform(kw, (fan_in, fan_out), jnp.float32, -bound, bound)
        b = jax.random.uniform(kb, (1, fan_out), jnp.float32, -bound, bound)
        return w, b

    wq, bq = init_linear(keys[2], keys[3], query_dim, query_dim)
    wkv, bkv = init_linear(keys[4], keys[5], context_dim, 2 * query_dim)
    wo, bo = init_linear(keys[6], keys[7], query_dim, query_dim)
    params = dict(wq=wq, bq=bq, wkv=wkv, bkv=bkv, wo=wo, bo=bo)

    fn = jax.jit(functools.partial(flash_cross_attention, num_heads=num_heads))
    out = jax.block_until_ready(fn(x, context, params))

    ref = _reference(x, context, params, num_heads=num_heads)
    assert out.shape == (B, Nq, query_dim)
    # bf16 matmul operands (autocast-equivalent) vs fp32 reference -> loose tol.
    assert jnp.allclose(out, ref, rtol=5e-2, atol=5e-2), (
        float(jnp.max(jnp.abs(out - ref))))

    print("KERNEL_OK")
</pallas_src>

<mosaic_0001>
module attributes {stable_mosaic.version = 11 : i64} {
  func.func @_flash_cross_attn_kernel(%arg0: i32, %arg1: i32, %arg2: i32, %arg3: memref<1x8x32xbf16, #tpu.memory_space<vmem>>, %arg4: memref<1x4x16x8xbf16, #tpu.memory_space<vmem>>, %arg5: memref<1x4x16x8xbf16, #tpu.memory_space<vmem>>, %arg6: memref<32x32xbf16, #tpu.memory_space<vmem>>, %arg7: memref<1x32xf32, #tpu.memory_space<vmem>>, %arg8: memref<32x32xbf16, #tpu.memory_space<vmem>>, %arg9: memref<1x32xf32, #tpu.memory_space<vmem>>, %arg10: memref<1x8x32xf32, #tpu.memory_space<vmem>>, %arg11: memref<4x8x8xbf16, #tpu.memory_space<vmem>>, %arg12: memref<4x8x1xf32, #tpu.memory_space<vmem>>, %arg13: memref<4x8x1xf32, #tpu.memory_space<vmem>>, %arg14: memref<4x8x8xf32, #tpu.memory_space<vmem>>) attributes {dimension_semantics = [#tpu.dimension_semantics<parallel>, #tpu.dimension_semantics<parallel>, #tpu.dimension_semantics<arbitrary>], iteration_bounds = array<i64: 2, 1, 1>, scalar_prefetch = 0 : i64, scratch_operands = 4 : i64, tpu.core_type = #tpu.core_type<tc>, window_params = [{transform_indices = @transform_0, window_bounds = array<i64: 1, 8, 32>}, {transform_indices = @transform_1, window_bounds = array<i64: 1, 4, 16, 8>}, {transform_indices = @transform_2, window_bounds = array<i64: 1, 4, 16, 8>}, {pipeline_mode = #tpu.pipeline_mode<synchronous>, transform_indices = @transform_3, window_bounds = array<i64: 32, 32>}, {pipeline_mode = #tpu.pipeline_mode<synchronous>, transform_indices = @transform_4, window_bounds = array<i64: 1, 32>}, {pipeline_mode = #tpu.pipeline_mode<synchronous>, transform_indices = @transform_5, window_bounds = array<i64: 32, 32>}, {pipeline_mode = #tpu.pipeline_mode<synchronous>, transform_indices = @transform_6, window_bounds = array<i64: 1, 32>}, {transform_indices = @transform_7, window_bounds = array<i64: 1, 8, 32>}]} {
    %c0_i32 = arith.constant 0 : i32
    %0 = arith.cmpi eq, %arg2, %c0_i32 : i32
    %1 = arith.extui %0 : i1 to i32
    %c0_i32_0 = arith.constant 0 : i32
    %2 = arith.cmpi ne, %1, %c0_i32_0 : i32
    scf.if %2 {
      %c0_34 = arith.constant 0 : index
      %c0_35 = arith.constant 0 : index
      %c0_36 = arith.constant 0 : index
      %35 = vector.load %arg3[%c0_34, %c0_35, %c0_36] : memref<1x8x32xbf16, #tpu.memory_space<vmem>>, vector<1x8x32xbf16>
      %36 = vector.shape_cast %35 : vector<1x8x32xbf16> to vector<8x32xbf16>
      %c0_37 = arith.constant 0 : index
      %c0_38 = arith.constant 0 : index
      %37 = vector.load %arg6[%c0_37, %c0_38] : memref<32x32xbf16, #tpu.memory_space<vmem>>, vector<32x32xbf16>
      %cst_39 = arith.constant dense<0.000000e+00> : vector<8x32xf32>
      %38 = tpu.matmul %36, %37, %cst_39 {dimension_numbers = #tpu.dot_dimension_numbers<[1], [0], [0], [1], [0, 0, 1, 1], [], []>} : vector<8x32xbf16>, vector<32x32xbf16>, vector<8x32xf32> -> vector<8x32xf32>
      %c0_40 = arith.constant 0 : index
      %c0_41 = arith.constant 0 : index
      %39 = vector.load %arg7[%c0_40, %c0_41] : memref<1x32xf32, #tpu.memory_space<vmem>>, vector<1x32xf32>
      %40 = vector.broadcast %39 : vector<1x32xf32> to vector<8x32xf32>
      %41 = arith.addf %38, %40 : vector<8x32xf32>
      %42 = arith.truncf %41 : vector<8x32xf32> to vector<8x32xbf16>
      %43 = vector.shape_cast %42 : vector<8x32xbf16> to vector<8x4x8xbf16>
      %44 = tpu.transpose %43, [1, 0, 2] : vector<8x4x8xbf16> -> vector<4x8x8xbf16>
      %c0_42 = arith.constant 0 : index
      %c0_43 = arith.constant 0 : index
      %c0_44 = arith.constant 0 : index
      %45 = vector.load %arg11[%c0_42, %c0_43, %c0_44] : memref<4x8x8xbf16, #tpu.memory_space<vmem>>, vector<4x8x8xbf16>
      tpu.vector_store %arg11[%c0_42, %c0_43, %c0_44], %44 {strides = array<i32>} : memref<4x8x8xbf16, #tpu.memory_space<vmem>>, vector<4x8x8xbf16>,
      %cst_45 = arith.constant 0xFF800000 : f32
      %46 = vector.broadcast %cst_45 : f32 to vector<4x8x1xf32>
      %c0_46 = arith.constant 0 : index
      %c0_47 = arith.constant 0 : index
      %c0_48 = arith.constant 0 : index
      %47 = vector.load %arg12[%c0_46, %c0_47, %c0_48] : memref<4x8x1xf32, #tpu.memory_space<vmem>>, vector<4x8x1xf32>
      tpu.vector_store %arg12[%c0_46, %c0_47, %c0_48], %46 {strides = array<i32>} : memref<4x8x1xf32, #tpu.memory_space<vmem>>, vector<4x8x1xf32>,
      %cst_49 = arith.constant 0.000000e+00 : f32
      %48 = vector.broadcast %cst_49 : f32 to vector<4x8x1xf32>
      %c0_50 = arith.constant 0 : index
      %c0_51 = arith.constant 0 : index
      %c0_52 = arith.constant 0 : index
      %49 = vector.load %arg13[%c0_50, %c0_51, %c0_52] : memref<4x8x1xf32, #tpu.memory_space<vmem>>, vector<4x8x1xf32>
      tpu.vector_store %arg13[%c0_50, %c0_51, %c0_52], %48 {strides = array<i32>} : memref<4x8x1xf32, #tpu.memory_space<vmem>>, vector<4x8x1xf32>,
      %cst_53 = arith.constant 0.000000e+00 : f32
      %50 = vector.broadcast %cst_53 : f32 to vector<4x8x8xf32>
      %c0_54 = arith.constant 0 : index
      %c0_55 = arith.constant 0 : index
      %c0_56 = arith.constant 0 : index
      %51 = vector.load %arg14[%c0_54, %c0_55, %c0_56] : memref<4x8x8xf32, #tpu.memory_space<vmem>>, vector<4x8x8xf32>
      tpu.vector_store %arg14[%c0_54, %c0_55, %c0_56], %50 {strides = array<i32>} : memref<4x8x8xf32, #tpu.memory_space<vmem>>, vector<4x8x8xf32>,
    } else {
    }
    %c0 = arith.constant 0 : index
    %c0_1 = arith.constant 0 : index
    %c0_2 = arith.constant 0 : index
    %3 = vector.load %arg11[%c0, %c0_1, %c0_2] : memref<4x8x8xbf16, #tpu.memory_space<vmem>>, vector<4x8x8xbf16>
    %c0_3 = arith.constant 0 : index
    %c0_4 = arith.constant 0 : index
    %c0_5 = arith.constant 0 : index
    %c0_6 = arith.constant 0 : index
    %4 = vector.load %arg4[%c0_3, %c0_4, %c0_5, %c0_6] : memref<1x4x16x8xbf16, #tpu.memory_space<vmem>>, vector<1x4x16x8xbf16>
    %5 = vector.shape_cast %4 : vector<1x4x16x8xbf16> to vector<4x16x8xbf16>
    %c0_7 = arith.constant 0 : index
    %c0_8 = arith.constant 0 : index
    %c0_9 = arith.constant 0 : index
    %c0_10 = arith.constant 0 : index
    %6 = vector.load %arg5[%c0_7, %c0_8, %c0_9, %c0_10] : memref<1x4x16x8xbf16, #tpu.memory_space<vmem>>, vector<1x4x16x8xbf16>
    %7 = vector.shape_cast %6 : vector<1x4x16x8xbf16> to vector<4x16x8xbf16>
    %cst = arith.constant dense<0.000000e+00> : vector<4x8x16xf32>
    %8 = tpu.matmul %3, %5, %cst {dimension_numbers = #tpu.dot_dimension_numbers<[2], [2], [1], [1], [0, 0, 0, 1, 1, 1], [0], [0]>} : vector<4x8x8xbf16>, vector<4x16x8xbf16>, vector<4x8x16xf32> -> vector<4x8x16xf32>
    %c0_11 = arith.constant 0 : index
    %c0_12 = arith.constant 0 : index
    %c0_13 = arith.constant 0 : index
    %9 = vector.load %arg12[%c0_11, %c0_12, %c0_13] : memref<4x8x1xf32, #tpu.memory_space<vmem>>, vector<4x8x1xf32>
    %cst_14 = arith.constant dense<0xFF800000> : vector<4x8xf32>
    %10 = vector.multi_reduction <maximumf>, %8, %cst_14 [2] : vector<4x8x16xf32> to vector<4x8xf32>
    %11 = vector.shape_cast %10 : vector<4x8xf32> to vector<4x8x1xf32>
    %12 = arith.maximumf %9, %11 : vector<4x8x1xf32>
    %13 = arith.subf %9, %12 : vector<4x8x1xf32>
    %14 = math.exp %13 : vector<4x8x1xf32>
    %15 = vector.broadcast %12 : vector<4x8x1xf32> to vector<4x8x16xf32>
    %16 = arith.subf %8, %15 : vector<4x8x16xf32>
    %17 = math.exp %16 : vector<4x8x16xf32>
    %c0_15 = arith.constant 0 : index
    %c0_16 = arith.constant 0 : index
    %c0_17 = arith.constant 0 : index
    %18 = vector.load %arg13[%c0_15, %c0_16, %c0_17] : memref<4x8x1xf32, #tpu.memory_space<vmem>>, vector<4x8x1xf32>
    %19 = arith.mulf %14, %18 : vector<4x8x1xf32>
    %cst_18 = arith.constant dense<0.000000e+00> : vector<4x8xf32>
    %20 = vector.multi_reduction <add>, %17, %cst_18 [2] : vector<4x8x16xf32> to vector<4x8xf32>
    %21 = vector.shape_cast %20 : vector<4x8xf32> to vector<4x8x1xf32>
    %22 = arith.addf %19, %21 : vector<4x8x1xf32>
    %c0_19 = arith.constant 0 : index
    %c0_20 = arith.constant 0 : index
    %c0_21 = arith.constant 0 : index
    %23 = vector.load %arg13[%c0_19, %c0_20, %c0_21] : memref<4x8x1xf32, #tpu.memory_space<vmem>>, vector<4x8x1xf32>
    tpu.vector_store %arg13[%c0_19, %c0_20, %c0_21], %22 {strides = array<i32>} : memref<4x8x1xf32, #tpu.memory_space<vmem>>, vector<4x8x1xf32>,
    %24 = arith.truncf %17 : vector<4x8x16xf32> to vector<4x8x16xbf16>
    %cst_22 = arith.constant dense<0.000000e+00> : vector<4x8x8xf32>
    %25 = tpu.matmul %24, %7, %cst_22 {dimension_numbers = #tpu.dot_dimension_numbers<[2], [1], [1], [2], [0, 0, 0, 1, 1, 2], [0], [0]>} : vector<4x8x16xbf16>, vector<4x16x8xbf16>, vector<4x8x8xf32> -> vector<4x8x8xf32>
    %c0_23 = arith.constant 0 : index
    %c0_24 = arith.constant 0 : index
    %c0_25 = arith.constant 0 : index
    %26 = vector.load %arg14[%c0_23, %c0_24, %c0_25] : memref<4x8x8xf32, #tpu.memory_space<vmem>>, vector<4x8x8xf32>
    %27 = vector.broadcast %14 : vector<4x8x1xf32> to vector<4x8x8xf32>
    %28 = arith.mulf %27, %26 : vector<4x8x8xf32>
    %29 = arith.addf %28, %25 : vector<4x8x8xf32>
    %c0_26 = arith.constant 0 : index
    %c0_27 = arith.constant 0 : index
    %c0_28 = arith.constant 0 : index
    %30 = vector.load %arg14[%c0_26, %c0_27, %c0_28] : memref<4x8x8xf32, #tpu.memory_space<vmem>>, vector<4x8x8xf32>
    tpu.vector_store %arg14[%c0_26, %c0_27, %c0_28], %29 {strides = array<i32>} : memref<4x8x8xf32, #tpu.memory_space<vmem>>, vector<4x8x8xf32>,
    %c0_29 = arith.constant 0 : index
    %c0_30 = arith.constant 0 : index
    %c0_31 = arith.constant 0 : index
    %31 = vector.load %arg12[%c0_29, %c0_30, %c0_31] : memref<4x8x1xf32, #tpu.memory_space<vmem>>, vector<4x8x1xf32>
    tpu.vector_store %arg12[%c0_29, %c0_30, %c0_31], %12 {strides = array<i32>} : memref<4x8x1xf32, #tpu.memory_space<vmem>>, vector<4x8x1xf32>,
    %c0_i32_32 = arith.constant 0 : i32
    %32 = arith.cmpi eq, %arg2, %c0_i32_32 : i32
    %33 = arith.extui %32 : i1 to i32
    %c0_i32_33 = arith.constant 0 : i32
    %34 = arith.cmpi ne, %33, %c0_i32_33 : i32
    scf.if %34 {
      %c0_34 = arith.constant 0 : index
      %c0_35 = arith.constant 0 : index
      %c0_36 = arith.constant 0 : index
      %35 = vector.load %arg14[%c0_34, %c0_35, %c0_36] : memref<4x8x8xf32, #tpu.memory_space<vmem>>, vector<4x8x8xf32>
      %c0_37 = arith.constant 0 : index
      %c0_38 = arith.constant 0 : index
      %c0_39 = arith.constant 0 : index
      %36 = vector.load %arg13[%c0_37, %c0_38, %c0_39] : memref<4x8x1xf32, #tpu.memory_space<vmem>>, vector<4x8x1xf32>
      %37 = tpu.reciprocal %36 {approx = true} : vector<4x8x1xf32> -> vector<4x8x1xf32>
      %38 = vector.broadcast %37 : vector<4x8x1xf32> to vector<4x8x8xf32>
      %39 = arith.mulf %35, %38 : vector<4x8x8xf32>
      %40 = tpu.transpose %39, [1, 0, 2] : vector<4x8x8xf32> -> vector<8x4x8xf32>
      %41 = vector.shape_cast %40 : vector<8x4x8xf32> to vector<8x32xf32>
      %42 = arith.truncf %41 : vector<8x32xf32> to vector<8x32xbf16>
      %c0_40 = arith.constant 0 : index
      %c0_41 = arith.constant 0 : index
      %43 = vector.load %arg8[%c0_40, %c0_41] : memref<32x32xbf16, #tpu.memory_space<vmem>>, vector<32x32xbf16>
      %cst_42 = arith.constant dense<0.000000e+00> : vector<8x32xf32>
      %44 = tpu.matmul %42, %43, %cst_42 {dimension_numbers = #tpu.dot_dimension_numbers<[1], [0], [0], [1], [0, 0, 1, 1], [], []>} : vector<8x32xbf16>, vector<32x32xbf16>, vector<8x32xf32> -> vector<8x32xf32>
      %c0_43 = arith.constant 0 : index
      %c0_44 = arith.constant 0 : index
      %45 = vector.load %arg9[%c0_43, %c0_44] : memref<1x32xf32, #tpu.memory_space<vmem>>, vector<1x32xf32>
      %46 = vector.broadcast %45 : vector<1x32xf32> to vector<8x32xf32>
      %47 = arith.addf %44, %46 : vector<8x32xf32>
      %c0_45 = arith.constant 0 : index
      %c0_46 = arith.constant 0 : index
      %c0_47 = arith.constant 0 : index
      %48 = vector.load %arg10[%c0_45, %c0_46, %c0_47] : memref<1x8x32xf32, #tpu.memory_space<vmem>>, vector<1x8x32xf32>
      %49 = vector.shape_cast %48 : vector<1x8x32xf32> to vector<8x32xf32>
      %50 = vector.shape_cast %47 : vector<8x32xf32> to vector<1x8x32xf32>
      tpu.vector_store %arg10[%c0_45, %c0_46, %c0_47], %50 {strides = array<i32>} : memref<1x8x32xf32, #tpu.memory_space<vmem>>, vector<1x8x32xf32>,
    } else {
    }
    return
  }
  func.func @transform_0(%arg0: i32, %arg1: i32, %arg2: i32) -> (i32, i32, i32) {
    %c0_i32 = arith.constant 0 : i32
    %c0_i32_0 = arith.constant 0 : i32
    return %arg0, %arg1, %c0_i32 : i32, i32, i32
  }
  func.func @transform_1(%arg0: i32, %arg1: i32, %arg2: i32) -> (i32, i32, i32, i32) {
    %c0_i32 = arith.constant 0 : i32
    %c0_i32_0 = arith.constant 0 : i32
    %c0_i32_1 = arith.constant 0 : i32
    return %arg0, %c0_i32, %arg2, %c0_i32_0 : i32, i32, i32, i32
  }
  func.func @transform_2(%arg0: i32, %arg1: i32, %arg2: i32) -> (i32, i32, i32, i32) {
    %c0_i32 = arith.constant 0 : i32
    %c0_i32_0 = arith.constant 0 : i32
    %c0_i32_1 = arith.constant 0 : i32
    return %arg0, %c0_i32, %arg2, %c0_i32_0 : i32, i32, i32, i32
  }
  func.func @transform_3(%arg0: i32, %arg1: i32, %arg2: i32) -> (i32, i32) {
    %c0_i32 = arith.constant 0 : i32
    %c0_i32_0 = arith.constant 0 : i32
    %c0_i32_1 = arith.constant 0 : i32
    return %c0_i32, %c0_i32_0 : i32, i32
  }
  func.func @transform_4(%arg0: i32, %arg1: i32, %arg2: i32) -> (i32, i32) {
    %c0_i32 = arith.constant 0 : i32
    %c0_i32_0 = arith.constant 0 : i32
    %c0_i32_1 = arith.constant 0 : i32
    return %c0_i32, %c0_i32_0 : i32, i32
  }
  func.func @transform_5(%arg0: i32, %arg1: i32, %arg2: i32) -> (i32, i32) {
    %c0_i32 = arith.constant 0 : i32
    %c0_i32_0 = arith.constant 0 : i32
    %c0_i32_1 = arith.constant 0 : i32
    return %c0_i32, %c0_i32_0 : i32, i32
  }
  func.func @transform_6(%arg0: i32, %arg1: i32, %arg2: i32) -> (i32, i32) {
    %c0_i32 = arith.constant 0 : i32
    %c0_i32_0 = arith.constant 0 : i32
    %c0_i32_1 = arith.constant 0 : i32
    return %c0_i32, %c0_i32_0 : i32, i32
  }
  func.func @transform_7(%arg0: i32, %arg1: i32, %arg2: i32) -> (i32, i32, i32) {
    %c0_i32 = arith.constant 0 : i32
    %c0_i32_0 = arith.constant 0 : i32
    return %arg0, %arg1, %c0_i32 : i32, i32, i32
  }
}

</mosaic_0001>

<bundles_post_ra>
// kernel: flash_cross_attention.1
= control target key start
LH: loop header
LB: loop body
LE: loop exit
PB: predicated region body
PF: predicated region fallthrough
CT: control target
= control target key end

     0   :  { %12 = vsyncpa [#allocation7], 0  ;;  %s1839_s0 = inlined_call_operand.vmem [shape: bf16[2,8,32], index: 0, kind: input, shape index: {}]   ;;  %s1840_s1 = inlined_call_operand.vmem [shape: bf16[2,4,16,8], index: 1, kind: input, shape index: {}]   ;;  %s1841_s2 = inlined_call_operand.vmem [shape: bf16[2,4,16,8], index: 2, kind: input, shape index: {}]   ;;  %s1842_s3 = inlined_call_operand.vmem [shape: bf16[32,32], index: 3, kind: input, shape index: {}]   ;;  %s1843_s4 = inlined_call_operand.vmem [shape: f32[1,32], index: 4, kind: input, shape index: {}]   ;;  %s1844_s5 = inlined_call_operand.vmem [shape: bf16[32,32], index: 5, kind: input, shape index: {}]   ;;  %s1845_s6 = inlined_call_operand.vmem [shape: f32[1,32], index: 6, kind: input, shape index: {}]   ;;  %s1846_s7 = inlined_call_operand.hbm [shape: f32[2,8,32], index: 7, kind: output, shape index: {}]  }
   0x1   :  { %14 = vsyncpa [#allocation7 + $0x1], 0  ;;  %s1555_s24 = smov 0   ;;  %s1557_s25 = smov 0  }
   0x2   :  { %s1559_s26 = smov 0   ;;  %s1561_s27 = smov 0  }
   0x3   :  { %s1563_s28 = smov 0   ;;  %s1565_s29 = smov 0  }
   0x4 LB: > { %s1242_s30 = sadd.s32 4294967295, %s1502_s29   ;;  %s1243_s8 = sadd.s32 4294967294, %s1502_s29   ;;  %s1502_s29 = sphi %s1565_s29, %s20_s29   ;;  %s1498_s28 = sphi %s1563_s28, %s1853_s28   ;;  %s1494_s27 = sphi %s1561_s27, %s1852_s27   ;;  %s1490_s26 = sphi %s1559_s26, %s1851_s26   ;;  %s1486_s25 = sphi %s1557_s25, %s1850_s25   ;;  %s1482_s24 = sphi %s1555_s24, %s1849_s24  }
   0x5   : > { %s39_s9 = sadd.s32 1, %s1498_s28  ;;  %s216_s10 = sadd.s32 1, %s1490_s26 }
   0x6   : > { %p41_p0 = scmp.ge.s32.totalorder %s39_s9, 2  ;;  %p226_p1 = scmp.ne.s32.totalorder %s1490_s26, %s1486_s25 }
   0x7   : > { %p227_p2 = scmp.eq.s32.totalorder %s1242_s30, 1  ;;  %p232_p3 = scmp.ne.s32.totalorder %s1486_s25, %s1482_s24 }
   0x8   : > { %s1855_s9 = smov (%p41_p0, %s39_s9), 0  ;;  %p233_p5 = scmp.eq.s32.totalorder %s1243_s8, 1 }
   0x9   : > { %p1595_p4 = por %p227_p2, %p226_p1  ;;  %s211_s12 = ssub.s32 %s1498_s28, %s1855_s9 }
   0xa   : > { %p1246_p6 = scmp.ge.s32.totalorder %s1502_s29, 1  ;;  %p214_p7 = scmp.eq.s32.totalorder %s211_s12, 0 }
   0xb   : > { %p1602_p8 = por %p233_p5, %p232_p3  ;;  %p299_p9 = scmp.lt.s32.totalorder %s1502_s29, 3 }
   0xc   : > { %s1608_s14 = scalar_select %p214_p7, %s1490_s26, %s216_s10  }
   0xd   : > { %p300_p10 = pnand %p1246_p6, %p299_p9 }
   0xe   : > { %p351_p11 = scmp.lt.s32.totalorder (!%p300_p10), %s1494_s27, 1  ;;  %s1504_s10 = smov (!%p300_p10), 104  }
   0xf   : > { %303 = sbr.rel (%p300_p10) target bundleno = 1227 (0x4cb), region = 48  ;;  %s1505_s12 = smov (!%p300_p10), 120  }
  0x10   : > { %s1506_s15 = smov (!%p300_p10), 112   ;;  %s1513_s30 = smov (!%p300_p10), 16  }
  0x11   : > { %s1514_s8 = smov (!%p300_p10), 8   ;;  %s348_s17 = sand.u32 (!%p300_p10), 1, %s1486_s25  }
  0x12   : > { %s1312_s18 = sshll.u32 (!%p300_p10), %s1494_s27, 3 }
  0x14   : > { %v1318_v0 = vld [vmem:[%s1842_s3 + $0x8] sm:$0xff]  ;;  %v1317_v1 = vld [vmem:[%s1842_s3] sm:$0xff]  ;;  %s1618_s19 = scalar_select %p351_p11, %s1494_s27, 1  ;;  %vm404_vm0 = vcmask 261120   ;;  %v1507_v8 = vmov 1983009808  }
  0x15   : > { %414 = vmatpush.bf16.msra.mxu0 %v1318_v0  ;;  %v1398_v3 = vld [vmem:[%s1843_s4] ss:$0 sm:$0xff]  ;;  %v443_v9 = vunpack.c.l.s4 %v1507_v8  ;;  %vm562_vm1 = vcmask 64512   ;;  %v1508_v24 = vmov 1934713408   ;;  %vm452_vm2 = vcmask 1047556  }
  0x16   : > { %s1248_s20 = sshll.u32 %s1618_s19, 2  ;;  %s1315_s16 = sshll.u32 %s1618_s19, 5  ;;  %v457_v25 = vunpack.c.l.s4 %v1508_v24  ;;  %vm548_vm3 = vcmask 60416   ;;  %vm553_vm4 = vcmask 7168   ;;  %vm688_vm5 = vcmask 130048  }
  0x17   : > { %s357_s23 = scalar_lea.vmem %s1839_s0, %s1248_s20  ;;  %s366_s20 = scalar_lea.vmem %s1840_s1, %s1315_s16  ;;  %v1635_v15 = vunpack.c.0.s8 %v443_v9  ;;  %vm1074_vm6 = vcmask 195584  }
  0x18   : > { %v383_v2 = vld [vmem:[%s357_s23] sm:$0xf]  ;;  %v1320_v14 = vld [vmem:[%s366_s20 + $0x8] sm:$0xff]  ;;  %v1321_v18 = vld [vmem:[%s366_s20 + $0x10] sm:$0xff]  ;;  %v1642_v33 = vunpack.c.0.s8 %v457_v25  ;;  %s376_s23 = scalar_lea.vmem %s1841_s2, %s1315_s16  ;;  %s1512_s19 = smov 24  }
  0x19   : > { %415 = vmatpush.bf16.msra.mxu0 %v1317_v1  ;;  %v1319_v11 = vld [vmem:[%s366_s20] sm:$0xff]  ;;  %v621_v19 = vsel %vm562_vm1, %v1320_v14, 0  ;;  %v1322_v21 = vld [vmem:[%s366_s20 + $0x18] sm:$0xff]  ;;  %v645_v22 = vsel %vm562_vm1, %v1321_v18, 0  ;;  %s1247_s20 = sshll.u32 %s348_s17, 3  ;;  %s1116_s27 = scalar_lea.sflag [#allocation7], %s348_s17 }
  0x1a   : > { %v597_v13 = vsel %vm562_vm1, %v1319_v11, 0  ;;  %630 = vmatpush.bf16.xpose.msra.mxu2 %v621_v19  ;;  %654 = vmatpush.bf16.xpose.msra.mxu3 %v645_v22  ;;  %v669_v27 = vsel %vm562_vm1, %v1322_v21, 0 }
  0x1b   : > { %606 = vmatpush.bf16.xpose.msra.mxu1 %v597_v13 }
  0x1c   : > { %1261 = vmatmul.msk.bf16.vlgmr.msra.gmra.mxu0 %vm404_vm0, %v383_v2 }
  0x1d   : > { %678 = vmatpush.bf16.xpose.msrb.mxu0 %v669_v27 }
  0x99   : > { %v417_v4 = vpop.f32.mrf.mxu0 }
  0x9a   : > { %v418_v5 = vadd.f32 %v1398_v3, %v417_v4 }
  0x9c   : > { %v421_v6 = vpack.c.bf16 %v418_v5, %v418_v5 }
  0x9e   : > { %427 = vrot.lane.b32.xlu1 %v421_v6, %s1504_s10  ;;  %423 = vrot.lane.b32.xlu0 %v421_v6, %s1505_s12  ;;  %v432_v17 = vshrl.u32 %v421_v6, 16 }
  0xa1   : > { %v419_v7 = vpop.f32.mrf.mxu0 }
  0xa6   : > { %425 = vrot.lane.b32.xlu0 %v421_v6, %s1506_s15 }
 0x110   : > { %v424_v10 = vpop.permute.xlu0 %423  ;;  %v428_v23 = vpop.permute.xlu1 %427 }
 0x111   : > { %v433_v12 = vshrl.u32 %v424_v10, 16  ;;  %v431_v16 = vpack.i.b16 %v424_v10, %v421_v6  ;;  %v439_v29 = vshrl.u32 %v428_v23, 16 }
 0x113   : > { %v434_v20 = vpack.i.b16 %v433_v12, %v432_v17  ;;  %v445_v26 = vperm.slane %v431_v16, %v1635_v15 }
 0x115   : > { %v472_v30 = vperm.slane %v434_v20, %v1635_v15  ;;  %v454_v34 = vrot.slane %v445_v26, 4 }
 0x117   : > { %v480_v37 = vrot.slane %v472_v30, 4 }
 0x118   : > { %v426_v28 = vpop.permute.xlu0 %425 }
 0x119   : > { %v437_v31 = vpack.i.b16 %v428_v23, %v426_v28  ;;  %v438_v32 = vshrl.u32 %v426_v28, 16 }
 0x11b   : > { %v440_v35 = vpack.i.b16 %v439_v29, %v438_v32  ;;  %v450_v36 = vperm.slane %v437_v31, %v1635_v15 }
 0x11d   : > { %v451_v38 = vrot.slane %v450_v36, 4  ;;  %v455_v39 = vsel %vm452_vm2, %v450_v36, %v454_v34  ;;  %v477_v40 = vperm.slane %v440_v35, %v1635_v15 }
 0x11e   : > { %v463_v41 = vperm.slane %v455_v39, %v1642_v33 }
 0x11f   : > { %v453_v42 = vsel %vm452_vm2, %v451_v38, %v445_v26  ;;  %v478_v43 = vrot.slane %v477_v40, 4  ;;  %v481_v44 = vsel %vm452_vm2, %v477_v40, %v480_v37  ;;  %v1509_v26 = vmov -inf  }
 0x120   : > { %v459_v45 = vperm.slane %v453_v42, %v1642_v33  ;;  %v466_v46 = vrot.slane %v463_v41, 4  ;;  %v489_v47 = vperm.slane %v481_v44, %v1642_v33  ;;  %557 = vst.msk [vmem:[#allocation3 + $0x18] sm:$0xff] %vm553_vm4, %v1509_v26  ;;  %v1510_v40 = vmov 0  }
 0x121   : > { %v479_v48 = vsel %vm452_vm2, %v478_v43, %v472_v30  ;;  %554 = vst.msk [vmem:[#allocation3] sm:$0xff] %vm553_vm4, %v1509_v26  ;;  %1396 = vset.pattern.permute.xlu1 %v1510_v40  ;;  %1395 = vset.pattern.permute.xlu2 %v1510_v40  ;;  %v1511_v41 = vmov 0.0  }
 0x122   : > { %v464_v49 = vrot.slane %v459_v45, 4  ;;  %v467_v50 = vsel %vm452_vm2, 0, %v466_v46  ;;  %v485_v51 = vperm.slane %v479_v48, %v1642_v33  ;;  %v492_v52 = vrot.slane %v489_v47, 4  ;;  %555 = vst.msk [vmem:[#allocation3 + $0x8] sm:$0xff] %vm553_vm4, %v1509_v26  ;;  %1397 = vset.pattern.permute.xlu0 %v1510_v40 }
 0x123   : > { %v499_v53 = vrot.slane %v467_v50, 4  ;;  %v494_v57 = vsel %vm452_vm2, %v466_v46, %v459_v45  ;;  %556 = vst.msk [vmem:[#allocation3 + $0x10] sm:$0xff] %vm553_vm4, %v1509_v26 }
 0x124   : > { %v465_v54 = vsel %vm452_vm2, 0, %v464_v49  ;;  %v490_v55 = vrot.slane %v485_v51, 4  ;;  %v493_v56 = vsel %vm452_vm2, 0, %v492_v52  ;;  %v513_v62 = vsel %vm452_vm2, %v492_v52, %v485_v51  ;;  %565 = vst.msk [vmem:[#allocation5 + $0x10] sm:$0xff] %vm562_vm1, %v1511_v41 }
 0x125   : > { %v500_v58 = vsel %vm452_vm2, %v499_v53, %v465_v54  ;;  %v518_v59 = vrot.slane %v493_v56, 4  ;;  %v498_v0 = vperm.slane %v494_v57, %v1635_v15  ;;  %v517_v4 = vperm.slane %v513_v62, %v1635_v15  ;;  %558 = vst.msk [vmem:[#allocation4] sm:$0xff] %vm553_vm4, %v1511_v41 }
 0x126   : > { %v491_v60 = vsel %vm452_vm2, 0, %v490_v55  ;;  %v504_v61 = vperm.slane %v500_v58, %v1635_v15  ;;  %559 = vst.msk [vmem:[#allocation4 + $0x8] sm:$0xff] %vm553_vm4, %v1511_v41 }
 0x127   : > { %v519_v63 = vsel %vm452_vm2, %v518_v59, %v491_v60  ;;  %560 = vst.msk [vmem:[#allocation4 + $0x10] sm:$0xff] %vm553_vm4, %v1511_v41  ;;  %v687_v42 = vld [vmem:[#allocation3 + $0x18] sm:$0xff] }
 0x128   : > { %v505_v1 = vrot.slane %v504_v61, 4  ;;  %v523_v2 = vperm.slane %v519_v63, %v1635_v15  ;;  %561 = vst.msk [vmem:[#allocation4 + $0x18] sm:$0xff] %vm553_vm4, %v1511_v41  ;;  %v1707_v53 = vld [vmem:[#allocation3] sm:$0xff] }
 0x129   : > { %563 = vst.msk [vmem:[#allocation5] sm:$0xff] %vm562_vm1, %v1511_v41  ;;  %v685_v45 = vld [vmem:[#allocation3 + $0x8] sm:$0xff] }
 0x12a   : > { %v506_v3 = vsel %vm452_vm2, %v505_v1, %v498_v0  ;;  %v524_v5 = vrot.slane %v523_v2, 4  ;;  %564 = vst.msk [vmem:[#allocation5 + $0x8] sm:$0xff] %vm562_vm1, %v1511_v41  ;;  %v686_v46 = vld [vmem:[#allocation3 + $0x10] sm:$0xff]  ;;  %v1324_v0 = vld [vmem:[%s376_s23 + $0x8] sm:$0xff]  ;;  %v1325_v1 = vld [vmem:[%s376_s23 + $0x10] sm:$0xff] }
 0x12b   : > { %v510_v6 = vperm.slane %v506_v3, %v1642_v33  ;;  %566 = vst.msk [vmem:[#allocation5 + $0x18] sm:$0xff] %vm562_vm1, %v1511_v41  ;;  %820 = vmatpush.bf16.msrb.mxu2 %v1324_v0  ;;  %842 = vmatpush.bf16.msrb.mxu3 %v1325_v1  ;;  %v1323_v2 = vld [vmem:[%s376_s23] sm:$0xff]  ;;  %v1326_v3 = vld [vmem:[%s376_s23 + $0x18] sm:$0xff]  ;;  %s1127_s23 = scalar_lea.hbm %s1846_s7, %s1312_s18 }
 0x12c   : > { %v525_v7 = vsel %vm452_vm2, %v524_v5, %v517_v4  ;;  %798 = vmatpush.bf16.msrb.mxu1 %v1323_v2  ;;  %864 = vmatpush.bf16.msra.mxu0 %v1326_v3  ;;  %s1131_s12 = sshll.u32 %s1127_s23, 4  ;;  %s1132_s12 = int_to_ptr.hbm [resolvable:$true] %s1131_s12 }
 0x12d   : > { %v511_v8 = vrot.slane %v510_v6, 4  ;;  %v529_v9 = vperm.slane %v525_v7, %v1642_v33  ;;  %v536_v10 = vshrl.u32 %v510_v6, 16  ;;  %s1438_s15 = sshra.s32 %s1132_s12, 4  ;;  %s1439_s15 = int_to_ptr.hbm [resolvable:$true] %s1438_s15 }
 0x12e   : > { %s1440_s16 = scalar_lea.hbm %s1439_s15, 8  ;;  %p1445_p1 = scmp.lt.s32.totalorder %s1439_s15, %s1846_s7 }
 0x12f   : > { %v512_v11 = vsel %vm452_vm2, 0, %v511_v8  ;;  %v530_v12 = vrot.slane %v529_v9, 4  ;;  %v534_v13 = vpack.i.b16 %v529_v9, %v510_v6  ;;  %v537_v14 = vshrl.u32 %v529_v9, 16  ;;  %p1441_p12 = scmp.ne.s32.totalorder %s1439_s15, %s1440_s16 }
 0x130   : > { %v544_v19 = vshrl.u32 %v512_v11, 16 }
 0x131   : > { %v531_v16 = vsel %vm452_vm2, 0, %v530_v12  ;;  %v538_v17 = vpack.i.b16 %v537_v14, %v536_v10  ;;  %549 = vst.msk [vmem:[#allocation2] sm:$0xf] %vm548_vm3, %v534_v13  ;;  %p1442_p13 = pnand %p1441_p12, %p1595_p4 }
 0x132   : > { %v542_v18 = vpack.i.b16 %v531_v16, %v512_v11  ;;  %v545_v20 = vshrl.u32 %v531_v16, 16 }
 0x133   : > { %550 = vst.msk [vmem:[#allocation2 + $0x4] sm:$0xf] %vm548_vm3, %v538_v17  ;;  %p1443_p0 = pneg %p1442_p13 }
 0x134   : > { %v546_v21 = vpack.i.b16 %v545_v20, %v544_v19  ;;  %551 = vst.msk [vmem:[#allocation2 + $0x8] sm:$0xf] %vm548_vm3, %v542_v18 }
 0x136   : > { %552 = vst.msk [vmem:[#allocation2 + $0xc] sm:$0xf] %vm548_vm3, %v546_v21 }
 0x138   : > { %v567_v22 = vld [vmem:[#allocation2] sm:$0xf] }
 0x139   : > { %1266 = vmatmul.msk.bf16.vlgmr.msra.gmra.mxu1 %vm562_vm1, %v567_v22 }
 0x13a   : > { %v568_v23 = vld [vmem:[#allocation2 + $0x4] sm:$0xf] }
 0x13b   : > { %1271 = vmatmul.msk.bf16.vlgmr.msra.gmra.mxu2 %vm562_vm1, %v568_v23  ;;  %v569_v24 = vld [vmem:[#allocation2 + $0x8] sm:$0xf] }
 0x13c   : > { %1276 = vmatmul.msk.bf16.vlgmr.msra.gmra.mxu3 %vm562_vm1, %v569_v24 }
 0x13d   : > { %v570_v25 = vld [vmem:[#allocation2 + $0xc] sm:$0xf] }
 0x13e   : > { %1281 = vmatmul.msk.bf16.vlgmr.msrb.gmra.mxu0 %vm562_vm1, %v570_v25 }
 0x1b6   : > { %v1680_v27 = vpop.f32.mrf.mxu1 }
 0x1b7   : > { %v689_v39 = vsel %vm688_vm5, %v1680_v27, -inf }
 0x1bb   : > { %v1682_v28 = vpop.f32.mrf.mxu0 }
 0x1bc   : > { %v698_v29 = vsel %vm688_vm5, %v1682_v28, -inf }
 0x1bd   : > { %699 = vmax.xlane.f32.xlu0 %v698_v29 }
 0x1be   : > { %v610_v30 = vpop.f32.mrf.mxu1  ;;  %v1686_v31 = vpop.f32.mrf.mxu2 }
 0x1bf   : > { %v1688_v32 = vpop.f32.mrf.mxu3  ;;  %v692_v34 = vsel %vm688_vm5, %v1686_v31, -inf }
 0x1c0   : > { %693 = vmax.xlane.f32.xlu2 %v692_v34  ;;  %v695_v35 = vsel %vm688_vm5, %v1688_v32, -inf  ;;  %v751_v34 = vld [vmem:[#allocation4 + $0x10] sm:$0xff] }
 0x1c1   : > { %696 = vmax.xlane.f32.xlu1 %v695_v35 }
 0x1c3   : > { %v682_v36 = vpop.f32.mrf.mxu0 }
 0x1c6   : > { %v634_v37 = vpop.f32.mrf.mxu2 }
 0x1c7   : > { %v658_v38 = vpop.f32.mrf.mxu3 }
 0x1c8   : > { %690 = vmax.xlane.f32.xlu2 %v689_v39  ;;  %v749_v38 = vld [vmem:[#allocation4] sm:$0xff]  ;;  %v871_v39 = vld [vmem:[#allocation5 + $0x8] sm:$0xff] }
 0x230   : > { %v700_v43 = vpop.xlane.xlu0 %699 }
 0x231   : > { %v704_v44 = vmax.f32 %v687_v42, %v700_v43 }
 0x233   : > { %909 = vst.msk [vmem:[#allocation3 + $0x18] sm:$0xff] %vm553_vm4, %v704_v44  ;;  %v694_v47 = vpop.xlane.xlu2 %693  ;;  %734 = vperm.xlu1 %1396, %v704_v44   ;;  %v708_v54 = vsub.f32 %v687_v42, %v704_v44 }
 0x234   : > { %v702_v48 = vmax.f32 %v685_v45, %v694_v47  ;;  %v697_v49 = vpop.xlane.xlu1 %696 }
 0x235   : > { %v703_v50 = vmax.f32 %v686_v46, %v697_v49  ;;  %v715_v58 = vmul.f32 1.442695, %v708_v54  ;;  %v872_v49 = vld [vmem:[#allocation5 + $0x10] sm:$0xff] }
 0x236   : > { %907 = vst.msk [vmem:[#allocation3 + $0x8] sm:$0xff] %vm553_vm4, %v702_v48  ;;  %724 = vperm.xlu2 %1395, %v702_v48   ;;  %v706_v60 = vsub.f32 %v685_v45, %v702_v48  ;;  %v752_v48 = vld [vmem:[#allocation4 + $0x18] sm:$0xff] }
 0x237   : > { %v707_v51 = vsub.f32 %v686_v46, %v703_v50  ;;  %908 = vst.msk [vmem:[#allocation3 + $0x10] sm:$0xff] %vm553_vm4, %v703_v50 }
 0x238   : > { %v711_v61 = vmul.f32 1.442695, %v706_v60  ;;  %v873_v60 = vld [vmem:[#allocation5 + $0x18] sm:$0xff] }
 0x239   : > { %v713_v52 = vmul.f32 1.442695, %v707_v51 }
 0x23b   : > { %1400 = vpow2.f32 %v713_v52  ;;  %v691_v55 = vpop.xlane.xlu2 %690 }
 0x23c   : > { %v701_v56 = vmax.f32 %v1707_v53, %v691_v55  ;;  %1402 = vpow2.f32 %v715_v58 }
 0x23d   : > { %1404 = vpow2.f32 %v711_v61  ;;  %v750_v61 = vld [vmem:[#allocation4 + $0x8] sm:$0xff] }
 0x23e   : > { %v705_v57 = vsub.f32 %v1707_v53, %v701_v56  ;;  %906 = vst.msk [vmem:[#allocation3] sm:$0xff] %vm553_vm4, %v701_v56  ;;  %729 = vperm.xlu2 %1395, %v703_v50  }
 0x240   : > { %v709_v29 = vmul.f32 1.442695, %v705_v57 }
 0x241   : > { %v1712_v59 = vpop.eup %1400 }
 0x242   : > { %886 = vperm.xlu1 %1396, %v1712_v59   ;;  %v1715_v62 = vpop.eup %1402  ;;  %v755_v35 = vmul.f32 %v1712_v59, %v751_v34 }
 0x243   : > { %v1718_v63 = vpop.eup %1404  ;;  %v756_v50 = vmul.f32 %v1715_v62, %v752_v48 }
 0x246   : > { %719 = vperm.xlu2 %1395, %v701_v56  }
 0x24a   : > { %891 = vperm.xlu1 %1396, %v1715_v62   ;;  %v754_v62 = vmul.f32 %v1718_v63, %v750_v61 }
 0x252   : > { %881 = vperm.xlu1 %1396, %v1718_v63   ;;  %v870_v63 = vld [vmem:[#allocation5] sm:$0xff] }
 0x290   : > { %v725_v4 = vpop.permute.xlu2 %724 }
 0x291   : > { %v738_v5 = vsub.f32 %v1686_v31, %v725_v4 }
 0x293   : > { %v743_v6 = vmul.f32 1.442695, %v738_v5 }
 0x295   : > { %1406 = vpow2.f32 %v743_v6 }
 0x298   : > { %v730_v7 = vpop.permute.xlu2 %729 }
 0x299   : > { %v739_v8 = vsub.f32 %v1688_v32, %v730_v7 }
 0x29b   : > { %v1407_v9 = vpop.eup %1406  ;;  %v745_v10 = vmul.f32 1.442695, %v739_v8 }
 0x29c   : > { %v779_v11 = vpack.c.bf16 %v1407_v9, %v1407_v9 }
 0x29d   : > { %1408 = vpow2.f32 %v745_v10 }
 0x29e   : > { %1291 = vmatmul.msk.bf16.vlgmr.msrb.gmra.mxu2 %vm688_vm5, %v779_v11 }
 0x2a0   : > { %v720_v12 = vpop.permute.xlu2 %719 }
 0x2a1   : > { %v737_v13 = vsub.f32 %v1680_v27, %v720_v12 }
 0x2a3   : > { %v1409_v14 = vpop.eup %1408  ;;  %v741_v16 = vmul.f32 1.442695, %v737_v13 }
 0x2a4   : > { %v763_v17 = vsel %vm688_vm5, %v1409_v14, 0.0  ;;  %v780_v18 = vpack.c.bf16 %v1409_v14, %v1409_v14 }
 0x2a5   : > { %1410 = vpow2.f32 %v741_v16  ;;  %764 = vadd.xlane.f32.xlu2 %v763_v17  ;;  %v735_v19 = vpop.permute.xlu1 %734 }
 0x2a6   : > { %v740_v20 = vsub.f32 %v1682_v28, %v735_v19  ;;  %1296 = vmatmul.msk.bf16.vlgmr.msrb.gmra.mxu3 %vm688_vm5, %v780_v18  ;;  %v760_v28 = vsel %vm688_vm5, %v1407_v9, 0.0 }
 0x2a8   : > { %v747_v21 = vmul.f32 1.442695, %v740_v20 }
 0x2aa   : > { %1412 = vpow2.f32 %v747_v21 }
 0x2ab   : > { %v1411_v22 = vpop.eup %1410  ;;  %1414 = vpow2.f32 %v709_v29 }
 0x2ac   : > { %v757_v23 = vsel %vm688_vm5, %v1411_v22, 0.0  ;;  %v778_v24 = vpack.c.bf16 %v1411_v22, %v1411_v22 }
 0x2ad   : > { %758 = vadd.xlane.f32.xlu0 %v757_v23 }
 0x2ae   : > { %1286 = vmatmul.msk.bf16.vlgmr.msrb.gmra.mxu1 %vm688_vm5, %v778_v24 }
 0x2b0   : > { %v1413_v25 = vpop.eup %1412 }
 0x2b1   : > { %v781_v26 = vpack.c.bf16 %v1413_v25, %v1413_v25  ;;  %v766_v27 = vsel %vm688_vm5, %v1413_v25, 0.0  ;;  %v1415_v30 = vpop.eup %1414 }
 0x2b2   : > { %v753_v41 = vmul.f32 %v1415_v30, %v749_v38 }
 0x2b3   : > { %1301 = vmatmul.msk.bf16.vlgmr.msra.gmra.mxu0 %vm688_vm5, %v781_v26 }
 0x2b4   : > { %v887_v31 = vpop.permute.xlu1 %886 }
 0x2b5   : > { %767 = vadd.xlane.f32.xlu0 %v766_v27  ;;  %v896_v51 = vmul.f32 %v887_v31, %v872_v49 }
 0x2bc   : > { %v892_v32 = vpop.permute.xlu1 %891 }
 0x2bd   : > { %761 = vadd.xlane.f32.xlu0 %v760_v28  ;;  %v897_v0 = vmul.f32 %v892_v32, %v873_v60 }
 0x2c4   : > { %v882_v40 = vpop.permute.xlu1 %881 }
 0x2c5   : > { %v895_v42 = vmul.f32 %v882_v40, %v871_v39 }
 0x2d1   : > { %876 = vperm.xlu0 %1397, %v1415_v30  }
 0x318   : > { %v765_v36 = vpop.xlane.xlu2 %764 }
 0x319   : > { %v771_v37 = vadd.f32 %v765_v36, %v755_v35 }
 0x31b   : > { %776 = vst.msk [vmem:[#allocation4 + $0x10] sm:$0xff] %vm553_vm4, %v771_v37 }
 0x320   : > { %v759_v43 = vpop.xlane.xlu0 %758 }
 0x321   : > { %v769_v44 = vadd.f32 %v759_v43, %v753_v41  ;;  %v822_v45 = vpop.f32.mrf.mxu2 }
 0x322   : > { %v899_v46 = vadd.f32 %v895_v42, %v822_v45  ;;  %v919_v47 = vld [vmem:[#allocation4 + $0x10] sm:$0xff] }
 0x323   : > { %774 = vst.msk [vmem:[#allocation4] sm:$0xff] %vm553_vm4, %v769_v44  ;;  %1416 = vrcp.f32 %v919_v47 }
 0x324   : > { %903 = vst.msk [vmem:[#allocation5 + $0x8] sm:$0xff] %vm562_vm1, %v899_v46 }
 0x328   : > { %v768_v52 = vpop.xlane.xlu0 %767 }
 0x329   : > { %v1417_v53 = vpop.eup %1416  ;;  %v772_v54 = vadd.f32 %v768_v52, %v756_v50  ;;  %v824_v55 = vpop.f32.mrf.mxu2 }
 0x32a   : > { %v844_v56 = vpop.f32.mrf.mxu3  ;;  %937 = vperm.xlu2 %1395, %v1417_v53   ;;  %v917_v58 = vld [vmem:[#allocation4] sm:$0xff] }
 0x32b   : > { %v900_v57 = vadd.f32 %v896_v51, %v844_v56  ;;  %777 = vst.msk [vmem:[#allocation4 + $0x18] sm:$0xff] %vm553_vm4, %v772_v54  ;;  %v800_v59 = vpop.f32.mrf.mxu1  ;;  %1418 = vrcp.f32 %v917_v58  ;;  %v914_v31 = vld [vmem:[#allocation5 + $0x8] sm:$0xff] }
 0x32d   : > { %904 = vst.msk [vmem:[#allocation5 + $0x10] sm:$0xff] %vm562_vm1, %v900_v57 }
 0x330   : > { %v866_v1 = vpop.f32.mrf.mxu0  ;;  %v762_v2 = vpop.xlane.xlu0 %761 }
 0x331   : > { %v1419_v3 = vpop.eup %1418  ;;  %v901_v4 = vadd.f32 %v897_v0, %v866_v1  ;;  %v770_v5 = vadd.f32 %v762_v2, %v754_v62 }
 0x332   : > { %v846_v6 = vpop.f32.mrf.mxu3  ;;  %927 = vperm.xlu1 %1396, %v1419_v3   ;;  %v920_v7 = vld [vmem:[#allocation4 + $0x18] sm:$0xff] }
 0x333   : > { %905 = vst.msk [vmem:[#allocation5 + $0x18] sm:$0xff] %vm562_vm1, %v901_v4  ;;  %v802_v8 = vpop.f32.mrf.mxu1  ;;  %1420 = vrcp.f32 %v920_v7 }
 0x334   : > { %775 = vst.msk [vmem:[#allocation4 + $0x8] sm:$0xff] %vm553_vm4, %v770_v5  ;;  %v915_v19 = vld [vmem:[#allocation5 + $0x10] sm:$0xff] }
 0x338   : > { %v868_v9 = vpop.f32.mrf.mxu0 }
 0x339   : > { %v1421_v10 = vpop.eup %1420 }
 0x33a   : > { %942 = vperm.xlu1 %1396, %v1421_v10   ;;  %v916_v26 = vld [vmem:[#allocation5 + $0x18] sm:$0xff] }
 0x33b   : > { %v918_v11 = vld [vmem:[#allocation4 + $0x8] sm:$0xff] }
 0x33c   : > { %1422 = vrcp.f32 %v918_v11 }
 0x342   : > { %v1423_v12 = vpop.eup %1422 }
 0x343   : > { %932 = vperm.xlu1 %1396, %v1423_v12   ;;  %v877_v13 = vpop.permute.xlu0 %876 }
 0x344   : > { %v894_v14 = vmul.f32 %v877_v13, %v870_v63 }
 0x346   : > { %v898_v16 = vadd.f32 %v894_v14, %v800_v59 }
 0x348   : > { %902 = vst.msk [vmem:[#allocation5] sm:$0xff] %vm562_vm1, %v898_v16 }
 0x34f   : > { %v913_v20 = vld [vmem:[#allocation5] sm:$0xff] }
 0x384   : > { %v938_v18 = vpop.permute.xlu2 %937 }
 0x385   : > { %v947_v21 = vmul.f32 %v938_v18, %v915_v19 }
 0x387   : > { %v949_v24 = vrot.slane %v947_v21, 4 }
 0x3a4   : > { %v928_v17 = vpop.permute.xlu1 %927 }
 0x3a5   : > { %v945_v22 = vmul.f32 %v928_v17, %v913_v20 }
 0x3a7   : > { %v952_v25 = vrot.slane %v945_v22, 4  ;;  %v951_v27 = vsel %vm452_vm2, %v949_v24, %v945_v22 }
 0x3a8   : > { %v957_v30 = vperm.slane %v951_v27, %v1635_v15 }
 0x3a9   : > { %v953_v29 = vsel %vm452_vm2, %v947_v21, %v952_v25 }
 0x3aa   : > { %v961_v36 = vperm.slane %v953_v29, %v1635_v15  ;;  %v976_v39 = vrot.slane %v957_v30, 4 }
 0x3ac   : > { %v943_v23 = vpop.permute.xlu1 %942  ;;  %v988_v42 = vrot.slane %v961_v36, 4 }
 0x3ad   : > { %v948_v28 = vmul.f32 %v943_v23, %v916_v26 }
 0x3af   : > { %v962_v34 = vrot.slane %v948_v28, 4 }
 0x3b5   : > { %v933_v32 = vpop.permute.xlu1 %932 }
 0x3b6   : > { %v946_v35 = vmul.f32 %v933_v32, %v914_v31 }
 0x3b8   : > { %v963_v37 = vsel %vm452_vm2, %v962_v34, %v946_v35  ;;  %v964_v38 = vrot.slane %v946_v35, 4 }
 0x3b9   : > { %v969_v40 = vperm.slane %v963_v37, %v1635_v15  ;;  %v1399_v37 = vld [vmem:[%s1845_s6] ss:$0 sm:$0xff] }
 0x3ba   : > { %v965_v41 = vsel %vm452_vm2, %v948_v28, %v964_v38  ;;  %v1327_v28 = vld [vmem:[%s1844_s5] sm:$0xff] }
 0x3bb   : > { %v973_v43 = vperm.slane %v965_v41, %v1635_v15  ;;  %v974_v44 = vrot.slane %v969_v40, 4  ;;  %v977_v45 = vsel %vm452_vm2, %v969_v40, %v976_v39 }
 0x3bc   : > { %v985_v46 = vperm.slane %v977_v45, %v1642_v33 }
 0x3bd   : > { %v975_v47 = vsel %vm452_vm2, %v974_v44, %v957_v30  ;;  %v986_v48 = vrot.slane %v973_v43, 4  ;;  %v989_v49 = vsel %vm452_vm2, %v973_v43, %v988_v42 }
 0x3be   : > { %v981_v50 = vperm.slane %v975_v47, %v1642_v33  ;;  %v997_v51 = vperm.slane %v989_v49, %v1642_v33  ;;  %v1000_v52 = vrot.slane %v985_v46, 4 }
 0x3bf   : > { %v987_v53 = vsel %vm452_vm2, %v986_v48, %v961_v36 }
 0x3c0   : > { %v993_v54 = vperm.slane %v987_v53, %v1642_v33  ;;  %v998_v55 = vrot.slane %v981_v50, 4  ;;  %v1001_v56 = vsel %vm452_vm2, 0.0, %v1000_v52  ;;  %v1004_v57 = vrot.slane %v997_v51, 4 }
 0x3c1   : > { %v1006_v58 = vsel %vm452_vm2, %v1000_v52, %v981_v50  ;;  %v1011_v59 = vrot.slane %v1001_v56, 4 }
 0x3c2   : > { %v1005_v60 = vsel %vm452_vm2, 0.0, %v1004_v57  ;;  %v999_v61 = vsel %vm452_vm2, 0.0, %v998_v55  ;;  %v1002_v0 = vrot.slane %v993_v54, 4  ;;  %v1010_v62 = vperm.slane %v1006_v58, %v1635_v15 }
 0x3c3   : > { %v1022_v1 = vrot.slane %v1005_v60, 4  ;;  %v1012_v2 = vsel %vm452_vm2, %v1011_v59, %v999_v61  ;;  %v1017_v3 = vsel %vm452_vm2, %v1004_v57, %v993_v54 }
 0x3c4   : > { %v1003_v4 = vsel %vm452_vm2, 0.0, %v1002_v0  ;;  %v1016_v5 = vperm.slane %v1012_v2, %v1635_v15  ;;  %v1021_v6 = vperm.slane %v1017_v3, %v1635_v15  ;;  %v1030_v7 = vrot.slane %v1010_v62, 4 }
 0x3c5   : > { %v1023_v8 = vsel %vm452_vm2, %v1022_v1, %v1003_v4 }
 0x3c6   : > { %v1027_v9 = vperm.slane %v1023_v8, %v1635_v15  ;;  %v1031_v10 = vsel %vm452_vm2, %v1016_v5, %v1030_v7  ;;  %v1042_v11 = vrot.slane %v1021_v6, 4  ;;  %v1028_v63 = vrot.slane %v1016_v5, 4 }
 0x3c7   : > { %v1039_v12 = vperm.slane %v1031_v10, %v1642_v33 }
 0x3c8   : > { %v1043_v13 = vsel %vm452_vm2, %v1027_v9, %v1042_v11  ;;  %v1029_v14 = vsel %vm452_vm2, %v1028_v63, %v1010_v62  ;;  %v1040_v16 = vrot.slane %v1027_v9, 4 }
 0x3c9   : > { %v1051_v17 = vperm.slane %v1043_v13, %v1642_v33  ;;  %v1058_v18 = vrot.slane %v1039_v12, 4  ;;  %v1035_v19 = vperm.slane %v1029_v14, %v1642_v33 }
 0x3ca   : > { %v1041_v20 = vsel %vm452_vm2, %v1040_v16, %v1021_v6 }
 0x3cb   : > { %v1059_v15 = vsel %vm452_vm2, %v1051_v17, %v1058_v18  ;;  %v1056_v21 = vrot.slane %v1051_v17, 4  ;;  %v1047_v22 = vperm.slane %v1041_v20, %v1642_v33  ;;  %v1054_v23 = vrot.slane %v1035_v19, 4  ;;  %v1328_v33 = vld [vmem:[%s1844_s5 + $0x8] sm:$0xff] }
 0x3cc   : > { %1069 = vrot.lane.b32.xlu1 %v1059_v15, %s1512_s19  ;;  %1107 = vmatpush.bf16.msra.mxu1 %v1328_v33 }
 0x3cd   : > { %v1057_v24 = vsel %vm452_vm2, %v1056_v21, %v1039_v12  ;;  %v1052_v25 = vrot.slane %v1047_v22, 4  ;;  %v1055_v26 = vsel %vm452_vm2, %v1047_v22, %v1054_v23 }
 0x3ce   : > { %1065 = vrot.lane.b32.xlu0 %v1057_v24, %s1513_s30  ;;  %1061 = vrot.lane.b32.xlu2 %v1055_v26, %s1514_s8  ;;  %s350_s8 = scalar_lea.vmem [#allocation6], %s1247_s20  ;;  %s1444_s20 = scalar_lea.hbm %s1846_s7, 16 }
 0x3cf   : > { %v1053_v27 = vsel %vm452_vm2, %v1052_v25, %v1035_v19  ;;  %s1129_s10 = sshll.u32 %s350_s8, 4  ;;  %p1446_p2 = scmp.lt.s32.totalorder %s1444_s20, %s1440_s16  ;;  %s1130_s10 = int_to_ptr.vmem [resolvable:$true] %s1129_s10 }
 0x3d0   : > { %1108 = vmatpush.bf16.msra.mxu1 %v1327_v28 }
 0x3d1   : > { %p1447_p3 = por %p1446_p2, %p1445_p1 }
 0x3d3   : > { %p1448_p5 = pnand %p1447_p3, %p1443_p0 }
 0x428   : > { %v1062_v29 = vpop.permute.xlu2 %1061 }
 0x429   : > { %v1072_v30 = vsel %vm562_vm1, %v1053_v27, %v1062_v29 }
 0x43e   : > { %v1070_v32 = vpop.permute.xlu1 %1069 }
 0x440   : > { %v1066_v31 = vpop.permute.xlu0 %1065 }
 0x441   : > { %v1073_v34 = vsel %vm688_vm5, %v1072_v30, %v1066_v31 }
 0x442   : > { %v1075_v35 = vsel %vm1074_vm6, %v1073_v34, %v1070_v32 }
 0x443   : > { %v1076_v36 = vpack.c.bf16 %v1075_v35, %v1075_v35 }
 0x445   : > { %1310 = vmatmul.msk.bf16.vlgmr.msra.gmra.mxu1 %vm404_vm0, %v1076_v36 }
 0x4c2   : > { %v1110_v38 = vpop.f32.mrf.mxu1 }
 0x4c3   : > { %v1111_v39 = vadd.f32 %v1399_v37, %v1110_v38 }
 0x4c5   : > { %1114 = vst.msk [vmem:[%s350_s8] sm:$0xff] %vm404_vm0, %v1111_v39 }
 0x4c6   : > { %1451 = shalt.err (!%p1448_p5)
}
 0x4c7   : > { %1329 = dma.vmem_to_hbm [thread:$0]  (%p1595_p4), %s1130_s10, 128, %s1132_s12, %s1116_s27  }
 0x4ca   : > { %v1112_v40 = vpop.f32.mrf.mxu1 }
 0x4cb PF: > { %p1335_p6 = scmp.ge.s32.totalorder %s1502_s29, 2  ;;  %s1143_s17 = sand.u32 1, %s1482_s24  }
 0x4cc   : > { %s1144_s19 = scalar_lea.sflag [#allocation7], %s1143_s17 }
 0x4cd   : > { %p1332_p7 = pnand %p1335_p6, %p1602_p8 }
 0x4cf   : > { %p1333_p9 = pneg %p1332_p7 }
 0x4d1   : > { %1477 = dma.done.wait (%p1333_p9), %s1144_s19, 128  }
 0x4d2   : > { %1479 = vsyncadd (%p1333_p9), %s1144_s19, 4294967168  ;;  %s20_s29 = sadd.s32 1, %s1502_s29   ;;  %s1849_s24 = smov %s1486_s25 }
 0x4d3   : > { %p17_p10 = scmp.ge.s32.totalorder %s20_s29, 4   ;;  %s1850_s25 = smov %s1490_s26 }
 0x4d4   : > { %s1851_s26 = smov %s1608_s14  ;;  %s1852_s27 = smov %s1498_s28 }
 0x4d5   : > { %s1853_s28 = smov %s1855_s9  ;;  %19 = sbr.rel (!%p17_p10) target bundleno = 4 (0x4), region = 97 }
 0x4da   :  { %1150 = vsyncpa [#allocation7], 1 }
 0x4db   :  { %1152 = vsyncpa [#allocation7 + $0x1], 1 }

</bundles_post_ra>
